<compile_context>
chip_gen: v7x
topology: tpu7x:2x2x1
jax: 0.10.0
libtpu: 0.0.40
codegen_flags: <defaults>
</compile_context>

<pallas_src>
import functools

import jax
import jax.numpy as jnp
from jax.experimental import pallas as pl
from jax.experimental.pallas import tpu as pltpu


def attn_classifier_kernel(x_ref, w1_ref, b1_ref, w2_ref, w3_ref, b3_ref,
                           logp_ref, attn_ref):
    x = x_ref[...]                                    # [Bb, T, H]
    Bb, T, H = x.shape

    # --- Attn.main: Linear(H, 24) -> ReLU ------------------------------------
    # Flatten the batch tile; layout-free when T % 8 == 0 (sublane-aligned).
    x2 = x.reshape(Bb * T, H)                         # [Bb*T, H]
    h1 = jnp.dot(x2, w1_ref[...],
                 preferred_element_type=jnp.float32) + b1_ref[...]   # [Bb*T, 24]
    h1 = jnp.maximum(h1, 0.0)

    # --- Linear(24, 1) as a VPU multiply + lane reduce (no N=1 MXU matmul). --
    # The Linear(24,1) bias is a constant added to every score and cancels
    # exactly in the softmax below, so it is not applied here.
    s = jnp.sum(h1 * w2_ref[...], axis=-1, keepdims=True)            # [Bb*T, 1]
    scores = s.reshape(Bb, T)                                         # [Bb, T]

    # --- softmax over the sequence axis (dim=1), max-stabilized --------------
    m = jnp.max(scores, axis=1, keepdims=True)
    e = jnp.exp(scores - m)
    denom = jnp.sum(e, axis=1, keepdims=True)
    # approx=True would offload to the EUP slot, but needs a looser tolerance;
    # the kernel is HBM-bound so the exact reciprocal costs nothing here.
    attn = e * pl.reciprocal(denom, approx=False)                     # [Bb, T]
    attn_ref[...] = attn.astype(attn_ref.dtype)

    # --- feats = (x * attns).sum(dim=1) --------------------------------------
    feats = jnp.sum(x.astype(jnp.float32) * attn[:, :, None], axis=1)  # [Bb, H]

    # --- classifier Linear(H, C) + log_softmax(dim=1) ------------------------
    logits = jnp.dot(feats.astype(w3_ref.dtype), w3_ref[...],
                     preferred_element_type=jnp.float32) + b3_ref[...]  # [Bb, C]
    lm = jnp.max(logits, axis=1, keepdims=True)
    z = logits - lm
    logp_ref[...] = (z - jnp.log(jnp.sum(jnp.exp(z), axis=1, keepdims=True))
                     ).astype(logp_ref.dtype)


def attn_classifier(x, w1, b1, w2, b2, w3, b3, *,
                    block_b=None,
                    stream_dtype=None,
                    vmem_limit_bytes=32 * 1024 * 1024):
    """x: [B, T, H]. Returns (log_probs [B, C], attns [B, T, 1]) in float32.

    stream_dtype: if e.g. jnp.bfloat16, x / w1 / w3 are streamed in that dtype
    (half the HBM bytes); accumulation and softmax math stay in float32.
    """
    B, T, H = x.shape
    C = w3.shape[1]

    # b2 (the Linear(24,1) bias) cancels under softmax -> not sent to the TPU.
    del b2
    w2_row = jnp.asarray(w2, jnp.float32).reshape(1, -1)     # [1, 24]
    b1 = jnp.asarray(b1, jnp.float32).reshape(1, -1)         # [1, 24]
    b3 = jnp.asarray(b3, jnp.float32).reshape(1, -1)         # [1, C]

    if stream_dtype is not None:
        x = x.astype(stream_dtype)
        w1 = w1.astype(stream_dtype)
        w3 = w3.astype(stream_dtype)
    w1 = jnp.asarray(w1)
    w3 = jnp.asarray(w3)

    # Batch tile: target ~2 MiB of x per block (x2 for double buffering), so the
    # pipeline fits comfortably inside v5e/v6e/v7x scoped VMEM. Keep the output
    # blocks' second-minor dim 8-aligned unless a single block covers all of B.
    if block_b is None:
        bytes_per_row = T * H * x.dtype.itemsize
        bb = max(1, (2 * 1024 * 1024) // bytes_per_row)
        if bb < B:
            bb = max(8, (bb // 8) * 8)
        block_b = int(min(bb, B))
    num_blocks = pl.cdiv(B, block_b)

    flops = (2 * B * T * H * 24          # Linear(H,24)
             + 2 * B * T * 24            # 24 -> 1 projection
             + 2 * B * T * H             # weighted sum over T
             + 2 * B * H * C)            # classifier
    transcendentals = B * T + B * C + 2 * B
    bytes_accessed = (x.size * x.dtype.itemsize
                      + w1.size * w1.dtype.itemsize
                      + w3.size * w3.dtype.itemsize
                      + 4 * (B * T + B * C + 2 * 24 + C))

    logp, attn = pl.pallas_call(
        attn_classifier_kernel,
        out_shape=(jax.ShapeDtypeStruct((B, C), jnp.float32),
                   jax.ShapeDtypeStruct((B, T), jnp.float32)),
        grid=(num_blocks,),
        in_specs=[
            pl.BlockSpec((block_b, T, H), lambda i: (i, 0, 0)),   # x
            pl.BlockSpec((H, 24), lambda i: (0, 0)),              # w1
            pl.BlockSpec((1, 24), lambda i: (0, 0)),              # b1
            pl.BlockSpec((1, 24), lambda i: (0, 0)),              # w2 (row)
            pl.BlockSpec((H, C), lambda i: (0, 0)),               # w3
            pl.BlockSpec((1, C), lambda i: (0, 0)),               # b3
        ],
        out_specs=(
            pl.BlockSpec((block_b, C), lambda i: (i, 0)),         # log_probs
            pl.BlockSpec((block_b, T), lambda i: (i, 0)),         # attn weights
        ),
        compiler_params=pltpu.CompilerParams(
            dimension_semantics=("parallel",),
            vmem_limit_bytes=vmem_limit_bytes,
        ),
        cost_estimate=pl.CostEstimate(flops=int(flops),
                                      transcendentals=int(transcendentals),
                                      bytes_accessed=int(bytes_accessed)),
    )(x, w1, b1, w2_row, w3, b3)
    return logp, attn[:, :, None]                     # match .unsqueeze(2)


def attn_classifier_ref(x, w1, b1, w2, b2, w3, b3):
    B, T, H = x.shape
    h1 = jnp.maximum(x.reshape(B * T, H) @ w1 + b1, 0.0)
    scores = (h1 @ w2 + b2).reshape(B, T)
    attn = jax.nn.softmax(scores, axis=1)
    feats = jnp.sum(x * attn[:, :, None], axis=1)
    logits = feats @ w3 + b3
    return jax.nn.log_softmax(logits, axis=1), attn[:, :, None]


if __name__ == "__main__":
    B, T, H, C = 16, 8, 32, 4
    key = jax.random.PRNGKey(0)
    ks = jax.random.split(key, 8)

    x = jax.random.normal(ks[0], (B, T, H), jnp.float32)
    # Attn.main[0]: Linear(h_dim, 24)   (weights stored as [in, out])
    w1 = jax.random.normal(ks[1], (H, 24), jnp.float32) * 0.1
    b1 = jax.random.normal(ks[2], (24,), jnp.float32) * 0.1
    # Attn.main[2]: Linear(24, 1)
    w2 = jax.random.normal(ks[3], (24, 1), jnp.float32) * 0.1
    b2 = jax.random.normal(ks[4], (1,), jnp.float32) * 0.1
    # AttnClassifier.main: Linear(h_dim, c_num)
    w3 = jax.random.normal(ks[5], (H, C), jnp.float32) * 0.1
    b3 = jax.random.normal(ks[6], (C,), jnp.float32) * 0.1

    logp_ref, attns_ref = attn_classifier_ref(x, w1, b1, w2, b2, w3, b3)

    # --- f32 streaming, 2-block batch grid (exercises pipelining) ------------
    run_f32 = jax.jit(functools.partial(attn_classifier, block_b=8))
    logp, attns = run_f32(x, w1, b1, w2, b2, w3, b3)
    jax.block_until_ready((logp, attns))

    assert logp.shape == (B, C) and attns.shape == (B, T, 1)
    assert jnp.allclose(logp, logp_ref, atol=1e-5, rtol=1e-5)
    assert jnp.allclose(attns, attns_ref, atol=1e-5, rtol=1e-5)

    # --- bf16 streaming of x / w1 / w3 (half the HBM bytes), looser tolerance -
    run_bf16 = jax.jit(functools.partial(attn_classifier, block_b=8,
                                         stream_dtype=jnp.bfloat16))
    logp_b, attns_b = run_bf16(x, w1, b1, w2, b2, w3, b3)
    jax.block_until_ready((logp_b, attns_b))

    assert jnp.allclose(logp_b, logp_ref, atol=5e-2, rtol=5e-2)
    assert jnp.allclose(attns_b, attns_ref, atol=5e-2, rtol=5e-2)

    print("KERNEL_OK")
</pallas_src>

<mosaic_0001>
module attributes {stable_mosaic.version = 11 : i64} {
  func.func @attn_classifier_kernel(%arg0: i32, %arg1: memref<8x8x32xf32, #tpu.memory_space<vmem>>, %arg2: memref<32x24xf32, #tpu.memory_space<vmem>>, %arg3: memref<1x24xf32, #tpu.memory_space<vmem>>, %arg4: memref<1x24xf32, #tpu.memory_space<vmem>>, %arg5: memref<32x4xf32, #tpu.memory_space<vmem>>, %arg6: memref<1x4xf32, #tpu.memory_space<vmem>>, %arg7: memref<8x4xf32, #tpu.memory_space<vmem>>, %arg8: memref<8x8xf32, #tpu.memory_space<vmem>>) attributes {dimension_semantics = [#tpu.dimension_semantics<parallel>], iteration_bounds = array<i64: 2>, scalar_prefetch = 0 : i64, scratch_operands = 0 : i64, tpu.core_type = #tpu.core_type<tc>, window_params = [{transform_indices = @transform_0, window_bounds = array<i64: 8, 8, 32>}, {pipeline_mode = #tpu.pipeline_mode<synchronous>, transform_indices = @transform_1, window_bounds = array<i64: 32, 24>}, {pipeline_mode = #tpu.pipeline_mode<synchronous>, transform_indices = @transform_2, window_bounds = array<i64: 1, 24>}, {pipeline_mode = #tpu.pipeline_mode<synchronous>, transform_indices = @transform_3, window_bounds = array<i64: 1, 24>}, {pipeline_mode = #tpu.pipeline_mode<synchronous>, transform_indices = @transform_4, window_bounds = array<i64: 32, 4>}, {pipeline_mode = #tpu.pipeline_mode<synchronous>, transform_indices = @transform_5, window_bounds = array<i64: 1, 4>}, {transform_indices = @transform_6, window_bounds = array<i64: 8, 4>}, {transform_indices = @transform_7, window_bounds = array<i64: 8, 8>}]} {
    %c0 = arith.constant 0 : index
    %c0_0 = arith.constant 0 : index
    %c0_1 = arith.constant 0 : index
    %0 = vector.load %arg1[%c0, %c0_0, %c0_1] : memref<8x8x32xf32, #tpu.memory_space<vmem>>, vector<8x8x32xf32>
    %1 = vector.shape_cast %0 : vector<8x8x32xf32> to vector<64x32xf32>
    %c0_2 = arith.constant 0 : index
    %c0_3 = arith.constant 0 : index
    %2 = vector.load %arg2[%c0_2, %c0_3] : memref<32x24xf32, #tpu.memory_space<vmem>>, vector<32x24xf32>
    %cst = arith.constant dense<0.000000e+00> : vector<64x24xf32>
    %3 = tpu.matmul %1, %2, %cst {dimension_numbers = #tpu.dot_dimension_numbers<[1], [0], [0], [1], [0, 0, 1, 1], [], []>} : vector<64x32xf32>, vector<32x24xf32>, vector<64x24xf32> -> vector<64x24xf32>
    %c0_4 = arith.constant 0 : index
    %c0_5 = arith.constant 0 : index
    %4 = vector.load %arg3[%c0_4, %c0_5] : memref<1x24xf32, #tpu.memory_space<vmem>>, vector<1x24xf32>
    %5 = vector.broadcast %4 : vector<1x24xf32> to vector<64x24xf32>
    %6 = arith.addf %3, %5 : vector<64x24xf32>
    %cst_6 = arith.constant 0.000000e+00 : f32
    %7 = vector.broadcast %cst_6 : f32 to vector<64x24xf32>
    %8 = arith.maximumf %6, %7 : vector<64x24xf32>
    %c0_7 = arith.constant 0 : index
    %c0_8 = arith.constant 0 : index
    %9 = vector.load %arg4[%c0_7, %c0_8] : memref<1x24xf32, #tpu.memory_space<vmem>>, vector<1x24xf32>
    %10 = vector.broadcast %9 : vector<1x24xf32> to vector<64x24xf32>
    %11 = arith.mulf %8, %10 : vector<64x24xf32>
    %cst_9 = arith.constant dense<0.000000e+00> : vector<64xf32>
    %12 = vector.multi_reduction <add>, %11, %cst_9 [1] : vector<64x24xf32> to vector<64xf32>
    %13 = vector.shape_cast %12 : vector<64xf32> to vector<64x1xf32>
    %14 = vector.shape_cast %13 : vector<64x1xf32> to vector<8x8xf32>
    %cst_10 = arith.constant dense<0xFF800000> : vector<8xf32>
    %15 = vector.multi_reduction <maximumf>, %14, %cst_10 [1] : vector<8x8xf32> to vector<8xf32>
    %16 = vector.shape_cast %15 : vector<8xf32> to vector<8x1xf32>
    %17 = vector.broadcast %16 : vector<8x1xf32> to vector<8x8xf32>
    %18 = arith.subf %14, %17 : vector<8x8xf32>
    %19 = math.exp %18 : vector<8x8xf32>
    %cst_11 = arith.constant dense<0.000000e+00> : vector<8xf32>
    %20 = vector.multi_reduction <add>, %19, %cst_11 [1] : vector<8x8xf32> to vector<8xf32>
    %21 = vector.shape_cast %20 : vector<8xf32> to vector<8x1xf32>
    %22 = tpu.reciprocal %21 : vector<8x1xf32> -> vector<8x1xf32>
    %23 = vector.broadcast %22 : vector<8x1xf32> to vector<8x8xf32>
    %24 = arith.mulf %19, %23 : vector<8x8xf32>
    %c0_12 = arith.constant 0 : index
    %c0_13 = arith.constant 0 : index
    %25 = vector.load %arg8[%c0_12, %c0_13] : memref<8x8xf32, #tpu.memory_space<vmem>>, vector<8x8xf32>
    tpu.vector_store %arg8[%c0_12, %c0_13], %24 {strides = array<i32>} : memref<8x8xf32, #tpu.memory_space<vmem>>, vector<8x8xf32>,
    %26 = vector.shape_cast %24 : vector<8x8xf32> to vector<8x8x1xf32>
    %27 = vector.broadcast %26 : vector<8x8x1xf32> to vector<8x8x32xf32>
    %28 = arith.mulf %0, %27 : vector<8x8x32xf32>
    %cst_14 = arith.constant dense<0.000000e+00> : vector<8x32xf32>
    %29 = vector.multi_reduction <add>, %28, %cst_14 [1] : vector<8x8x32xf32> to vector<8x32xf32>
    %c0_15 = arith.constant 0 : index
    %c0_16 = arith.constant 0 : index
    %30 = vector.load %arg5[%c0_15, %c0_16] : memref<32x4xf32, #tpu.memory_space<vmem>>, vector<32x4xf32>
    %cst_17 = arith.constant dense<0.000000e+00> : vector<8x4xf32>
    %31 = tpu.matmul %29, %30, %cst_17 {dimension_numbers = #tpu.dot_dimension_numbers<[1], [0], [0], [1], [0, 0, 1, 1], [], []>} : vector<8x32xf32>, vector<32x4xf32>, vector<8x4xf32> -> vector<8x4xf32>
    %c0_18 = arith.constant 0 : index
    %c0_19 = arith.constant 0 : index
    %32 = vector.load %arg6[%c0_18, %c0_19] : memref<1x4xf32, #tpu.memory_space<vmem>>, vector<1x4xf32>
    %33 = vector.broadcast %32 : vector<1x4xf32> to vector<8x4xf32>
    %34 = arith.addf %31, %33 : vector<8x4xf32>
    %cst_20 = arith.constant dense<0xFF800000> : vector<8xf32>
    %35 = vector.multi_reduction <maximumf>, %34, %cst_20 [1] : vector<8x4xf32> to vector<8xf32>
    %36 = vector.shape_cast %35 : vector<8xf32> to vector<8x1xf32>
    %37 = vector.broadcast %36 : vector<8x1xf32> to vector<8x4xf32>
    %38 = arith.subf %34, %37 : vector<8x4xf32>
    %39 = math.exp %38 : vector<8x4xf32>
    %cst_21 = arith.constant dense<0.000000e+00> : vector<8xf32>
    %40 = vector.multi_reduction <add>, %39, %cst_21 [1] : vector<8x4xf32> to vector<8xf32>
    %41 = vector.shape_cast %40 : vector<8xf32> to vector<8x1xf32>
    %42 = math.log %41 : vector<8x1xf32>
    %43 = vector.broadcast %42 : vector<8x1xf32> to vector<8x4xf32>
    %44 = arith.subf %38, %43 : vector<8x4xf32>
    %c0_22 = arith.constant 0 : index
    %c0_23 = arith.constant 0 : index
    %45 = vector.load %arg7[%c0_22, %c0_23] : memref<8x4xf32, #tpu.memory_space<vmem>>, vector<8x4xf32>
    tpu.vector_store %arg7[%c0_22, %c0_23], %44 {strides = array<i32>} : memref<8x4xf32, #tpu.memory_space<vmem>>, vector<8x4xf32>,
    return
  }
  func.func @transform_0(%arg0: i32) -> (i32, i32, i32) {
    %c0_i32 = arith.constant 0 : i32
    %c0_i32_0 = arith.constant 0 : i32
    %c0_i32_1 = arith.constant 0 : i32
    return %arg0, %c0_i32, %c0_i32_0 : i32, i32, i32
  }
  func.func @transform_1(%arg0: i32) -> (i32, i32) {
    %c0_i32 = arith.constant 0 : i32
    %c0_i32_0 = arith.constant 0 : i32
    %c0_i32_1 = arith.constant 0 : i32
    return %c0_i32, %c0_i32_0 : i32, i32
  }
  func.func @transform_2(%arg0: i32) -> (i32, i32) {
    %c0_i32 = arith.constant 0 : i32
    %c0_i32_0 = arith.constant 0 : i32
    %c0_i32_1 = arith.constant 0 : i32
    return %c0_i32, %c0_i32_0 : i32, i32
  }
  func.func @transform_3(%arg0: i32) -> (i32, i32) {
    %c0_i32 = arith.constant 0 : i32
    %c0_i32_0 = arith.constant 0 : i32
    %c0_i32_1 = arith.constant 0 : i32
    return %c0_i32, %c0_i32_0 : i32, i32
  }
  func.func @transform_4(%arg0: i32) -> (i32, i32) {
    %c0_i32 = arith.constant 0 : i32
    %c0_i32_0 = arith.constant 0 : i32
    %c0_i32_1 = arith.constant 0 : i32
    return %c0_i32, %c0_i32_0 : i32, i32
  }
  func.func @transform_5(%arg0: i32) -> (i32, i32) {
    %c0_i32 = arith.constant 0 : i32
    %c0_i32_0 = arith.constant 0 : i32
    %c0_i32_1 = arith.constant 0 : i32
    return %c0_i32, %c0_i32_0 : i32, i32
  }
  func.func @transform_6(%arg0: i32) -> (i32, i32) {
    %c0_i32 = arith.constant 0 : i32
    %c0_i32_0 = arith.constant 0 : i32
    return %arg0, %c0_i32 : i32, i32
  }
  func.func @transform_7(%arg0: i32) -> (i32, i32) {
    %c0_i32 = arith.constant 0 : i32
    %c0_i32_0 = arith.constant 0 : i32
    return %arg0, %c0_i32 : i32, i32
  }
}

</mosaic_0001>

<bundles_post_ra>
// kernel: attn_classifier.1
= control target key start
LH: loop header
LB: loop body
LE: loop exit
PB: predicated region body
PF: predicated region fallthrough
CT: control target
= control target key end

     0   :  { %13 = vsyncpa [#allocation3], 0  ;;  %s1690_s0 = inlined_call_operand.hbm [shape: f32[16,8,32], index: 0, kind: input, shape index: {}]   ;;  %s1691_s1 = inlined_call_operand.vmem [shape: f32[32,24], index: 1, kind: input, shape index: {}]   ;;  %s1692_s2 = inlined_call_operand.vmem [shape: f32[1,24], index: 2, kind: input, shape index: {}]   ;;  %s1693_s3 = inlined_call_operand.vmem [shape: f32[1,24], index: 3, kind: input, shape index: {}]   ;;  %s1694_s4 = inlined_call_operand.vmem [shape: f32[32,4], index: 4, kind: input, shape index: {}]   ;;  %s1695_s5 = inlined_call_operand.vmem [shape: f32[1,4], index: 5, kind: input, shape index: {}]   ;;  %s1696_s6 = inlined_call_operand.vmem [shape: f32[16,4], index: 6, kind: output, shape index: {0}]   ;;  %s1697_s7 = inlined_call_operand.vmem [shape: f32[16,8], index: 7, kind: output, shape index: {1}]  }
   0x1   :  { %15 = vsyncpa [#allocation3 + $0x1], 0  ;;  %s1379_s24 = smov 0   ;;  %s1381_s25 = smov 0  }
   0x2   :  { %s1383_s26 = smov 0   ;;  %s1385_s27 = smov 0  }
   0x3 LB: > { %s1398_s28 = sadd.s32 4294967295, %s1330_s27   ;;  %s1401_s29 = sadd.s32 1, %s1330_s27   ;;  %s1330_s27 = sphi %s1385_s27, %s1704_s27   ;;  %s1326_s26 = sphi %s1383_s26, %s1703_s26   ;;  %s1322_s25 = sphi %s1381_s25, %s1702_s25   ;;  %s1318_s24 = sphi %s1379_s24, %s1701_s24  }
   0x4   : > { %s25_s30 = ssub.s32 %s1330_s27, %s1401_s29  ;;  %s28_s8 = sadd.s32 1, %s1326_s26 }
   0x5   : > { %p26_p0 = scmp.eq.s32.totalorder %s25_s30, 0  ;;  %p35_p1 = scmp.ne.s32.totalorder %s1326_s26, %s1322_s25 }
   0x6   : > { %p36_p2 = scmp.eq.s32.totalorder %s1330_s27, 0  ;;  %p41_p3 = scmp.ne.s32.totalorder %s1322_s25, %s1318_s24 }
   0x7   : > { %s1411_s9 = scalar_select %p26_p0, %s1326_s26, %s28_s8  }
   0x8   : > { %p37_p4 = por %p36_p2, %p35_p1  ;;  %p42_p5 = scmp.eq.s32.totalorder %s1398_s28, 0 }
   0x9   : > { %p1203_p6 = scmp.lt.s32.totalorder %s1330_s27, 2  ;;  %s237_s11 = sand.u32 1, %s1326_s26  }
   0xa   : > { %p1415_p7 = por %p42_p5, %p41_p3  ;;  %s1113_s12 = sshll.u32 %s237_s11, 6 }
   0xb   : > { %s1134_s13 = sshll.u32 %s1330_s27, 10  ;;  %s241_s17 = scalar_lea.vmem [#allocation2], %s1113_s12 }
   0xc   : > { %s1424_s16 = scalar_lea.hbm %s1690_s0, %s1134_s13  ;;  %s248_s18 = sshll.u32 %s241_s17, 4  ;;  %s1426_s18 = int_to_ptr.vmem [resolvable:$true] %s248_s18 }
   0xd   : > { %p1428_p8 = pnand %p1203_p6, %p37_p4  ;;  %s1433_s20 = scalar_lea.sflag [#allocation3], %s237_s11 }
   0xe   : > { %s1266_s21 = scalar_lea.hbm %s1424_s16, 1024  ;;  %s1271_s24 = scalar_lea.hbm %s1690_s0, 2048 }
   0xf   : > { %p1267_p10 = scmp.ne.s32.totalorder %s1424_s16, %s1266_s21  ;;  %p1268_p11 = pneg %p1428_p8 }
  0x10   : > { %p1272_p0 = scmp.lt.u32.totalorder %s1424_s16, %s1690_s0  ;;  %p1273_p1 = scmp.lt.u32.totalorder %s1271_s24, %s1266_s21 }
  0x11   : > { %p1269_p12 = pnand %p1268_p11, %p1267_p10  ;;  %p1275_p3 = scmp.lt.u32.totalorder %s1266_s21, %s1424_s16 }
  0x12   : > { %p1274_p2 = por %p1273_p1, %p1272_p0 }
  0x13   : > { %p1270_p13 = pneg %p1269_p12 }
  0x14   : > { %p1276_p4 = por %p1275_p3, %p1274_p2 }
  0x16   : > { %p1277_p5 = pnand %p1276_p4, %p1270_p13 }
  0x18   : > { %1280 = shalt.err (!%p1277_p5)
}
  0x19   : > { %s1281_s11 = scalar_lea.vmem %s1426_s18, 1024  ;;  %s1332_s12 = smov [#allocation2]  }
  0x1a   : > { %p1282_p6 = scmp.ne.s32.totalorder %s1426_s18, %s1281_s11  ;;  %s1286_s13 = sshll.u32 %s1332_s12, 4  ;;  %s1287_s13 = int_to_ptr.vmem [resolvable:$false] %s1286_s13 }
  0x1b   : > { %s1288_s14 = scalar_lea.vmem %s1287_s13, 2048  ;;  %p1289_p9 = scmp.lt.s32.totalorder %s1426_s18, %s1287_s13 }
  0x1c   : > { %p1284_p10 = pnand %p1282_p6, %p1268_p11  ;;  %p1290_p0 = scmp.lt.s32.totalorder %s1288_s14, %s1281_s11 }
  0x1e   : > { %p1285_p12 = pneg %p1284_p10  ;;  %p1291_p1 = por %p1290_p0, %p1289_p9 }
  0x20   : > { %p1292_p2 = pnand %p1291_p1, %p1285_p12 }
  0x22   : > { %1295 = shalt.err (!%p1292_p2)
}
  0x23   : > { %s1333_s15 = smov 128   ;;  %s1334_s17 = smov 8  }
  0x24   : > { %1202 = dma.hbm_to_vmem [thread:$0]  (!%p1428_p8), %s1424_s16, 1024, %s1426_s18, %s1433_s20, %s1333_s15, %s1333_s15, %s1334_s17  }
  0x25   : > { %p256_p11 = scmp.lt.s32.totalorder %s1330_s27, 3  ;;  %p1700_p13 = scmp.ge.s32.totalorder %s1330_s27, 1 }
  0x27   : > { %p257_p3 = pnand %p1700_p13, %p256_p11 }
  0x28   : > { %s262_s21 = sand.u32 (!%p257_p3), 1, %s1322_s25  }
  0x29   : > { %260 = sbr.rel (%p257_p3) target bundleno = 1616 (0x650), region = 44  ;;  %s1117_s22 = sshll.u32 (!%p257_p3), %s262_s21, 6 }
  0x2a   : > { %s263_s23 = scalar_lea.sflag (!%p257_p3), [#allocation3], %s262_s21  ;;  %s266_s24 = scalar_lea.vmem (!%p257_p3), [#allocation2], %s1117_s22 }
  0x30   : > { %1313 = dma.done.wait (%p1415_p7), %s263_s23, 1024  }
  0x31   : > { %1315 = vsyncadd (%p1415_p7), %s263_s23, 4294966272  ;;  %vm328_vm0 = vcmask 261120   ;;  %v317_v0 = vld [vmem:[%s1691_s1] sm:$0xff]  ;;  %v318_v1 = vld [vmem:[%s1691_s1 + $0x8] sm:$0xff]  ;;  %vm481_vm1 = vcmask 195584   ;;  %v514_v56 = vlaneseq  ;;  %vm548_vm2 = vcmask 1041409  }
  0x32   : > { %v319_v2 = vld [vmem:[%s1691_s1 + $0x10] sm:$0xff]  ;;  %v1183_v3 = vpack.c.bf16 %v318_v1, %v317_v0  ;;  %v320_v4 = vld [vmem:[%s1691_s1 + $0x18] sm:$0xff]  ;;  %v1481_v5 = vld [vmem:[%s266_s24] sm:$0xff]  ;;  %vm550_vm3 = vcmask 1042434   ;;  %vm552_vm4 = vcmask 1043459   ;;  %vm554_vm5 = vcmask 1044484  }
  0x33   : > { %v1187_v6 = vpack.c.bf16 %v320_v4, %v319_v2  ;;  %1160 = vmatprep.mubr.msk.f32.mxu0 %vm328_vm0, %v1481_v5  ;;  %v1485_v7 = vld [vmem:[%s266_s24 + $0x8] sm:$0xff]  ;;  %v1487_v8 = vld [vmem:[%s266_s24 + $0x10] sm:$0xff]  ;;  %v1493_v9 = vld [vmem:[%s266_s24 + $0x18] sm:$0xff]  ;;  %v515_v57 = vand.u32 127, %v514_v56  ;;  %v1527_v58 = vshrl.u32 %v514_v56, 7  ;;  %vm556_vm6 = vcmask 1045509  }
  0x34   : > { %1184 = vmatprep.subr.bf16.mxu0 %v1183_v3  ;;  %v1495_v10 = vld [vmem:[%s266_s24 + $0x20] sm:$0xff]  ;;  %v1501_v11 = vld [vmem:[%s266_s24 + $0x28] sm:$0xff]  ;;  %v1503_v12 = vld [vmem:[%s266_s24 + $0x30] sm:$0xff]  ;;  %vm558_vm7 = vcmask 1046534   ;;  %vm560_vm8 = vcmask 1047559   ;;  %vm563_vm9 = vcmask 64512  }
  0x35   : > { %1186 = vmatpush3.bf16.msra.mxu0 %v1183_v3  ;;  %v1509_v13 = vld [vmem:[%s266_s24 + $0x38] sm:$0xff]  ;;  %v1120_v14 = vld [vmem:[%s1692_s2] ss:$0 sm:$0xff]  ;;  %v1530_v60 = vsub.s32 %v515_v57, %v1527_v58  ;;  %vm1337_vm10 = vmmov 0   ;;  %p301_p7 = scmp.lt.s32.totalorder %s1398_s28, 1  ;;  %vm1000_vm11 = vcmask 31744  }
  0x36   : > { %1188 = vmatprep.subr.bf16.mxu0 %v1187_v6  ;;  %v1129_v19 = vld [vmem:[%s1693_s3] ss:$0 sm:$0xff] }
  0x37   : > { %s1706_s28 = smov (!%p301_p7, %s1398_s28), 1 }
  0x38   : > { %s1118_s16 = sshll.u32 %s1706_s28, 3 }
  0x39   : > { %1190 = vmatpush3.bf16.msra.mxu0 %v1187_v6  ;;  %s308_s19 = scalar_lea.vmem %s1697_s7, %s1118_s16  ;;  %s304_s13 = scalar_lea.vmem %s1696_s6, %s1118_s16 }
  0x3c   : > { %1161 = vmatmul.mubr.msk.f32.vlgmr.msra.gmra.mrb[0].mxu0 %vm328_vm0, %v1485_v7 }
  0x3d   : > { %1163 = vmatprep.mubr.msk.f32.mxu0 %vm328_vm0, %v1487_v8 }
  0x40   : > { %1164 = vmatmul.mubr.msk.f32.gmra.mrb[2].mxu0 %vm328_vm0, %v1493_v9 }
  0x41   : > { %1166 = vmatprep.mubr.msk.f32.mxu0 %vm328_vm0, %v1495_v10 }
  0x44   : > { %1167 = vmatmul.mubr.msk.f32.gmra.mrb[4].mxu0 %vm328_vm0, %v1501_v11 }
  0x45   : > { %1169 = vmatprep.mubr.msk.f32.mxu0 %vm328_vm0, %v1503_v12 }
  0x48   : > { %1170 = vmatmul.mubr.msk.f32.gmra.mrb[6].mxu0 %vm328_vm0, %v1509_v13 }
 0x10f   : > { %v1162_v15 = vpop.f32.mrb[0].mxu0 }
 0x110   : > { %v425_v16 = vadd.f32 %v1162_v15, %v1120_v14  ;;  %v419_v17 = vpop.f32.mrb[1].mxu0 }
 0x111   : > { %v420_v18 = vadd.f32 %v1120_v14, %v419_v17 }
 0x112   : > { %v459_v20 = vmax.f32 %v425_v16, 0.0 }
 0x113   : > { %v458_v21 = vmax.f32 %v420_v18, 0.0  ;;  %v1165_v22 = vpop.f32.mrb[2].mxu0 }
 0x114   : > { %v435_v23 = vadd.f32 %v1165_v22, %v1120_v14  ;;  %v429_v24 = vpop.f32.mrb[3].mxu0  ;;  %v474_v25 = vmul.f32 %v1129_v19, %v459_v20 }
 0x115   : > { %v430_v26 = vadd.f32 %v1120_v14, %v429_v24  ;;  %v473_v29 = vmul.f32 %v1129_v19, %v458_v21 }
 0x116   : > { %v461_v27 = vmax.f32 %v435_v23, 0.0  ;;  %v485_v28 = vsel %vm481_vm1, %v474_v25, 0.0 }
 0x117   : > { %v460_v30 = vmax.f32 %v430_v26, 0.0  ;;  %486 = vadd.xlane.f32.xlu0 %v485_v28  ;;  %v1168_v31 = vpop.f32.mrb[4].mxu0  ;;  %v482_v38 = vsel %vm481_vm1, %v473_v29, 0.0  ;;  %v1335_v28 = vmov 0   ;;  %v570_v29 = vsub.s32 0, %v1527_v58 }
 0x118   : > { %v445_v32 = vadd.f32 %v1168_v31, %v1120_v14  ;;  %v439_v33 = vpop.f32.mrb[5].mxu0  ;;  %v476_v34 = vmul.f32 %v1129_v19, %v461_v27  ;;  %1243 = vset.pattern.permute.xlu0 %v1335_v28  ;;  %1242 = vset.pattern.permute.xlu1 %v1335_v28  ;;  %v578_v31 = vsub.s32 2, %v1527_v58 }
 0x119   : > { %v440_v35 = vadd.f32 %v1120_v14, %v439_v33  ;;  %v475_v39 = vmul.f32 %v1129_v19, %v460_v30  ;;  %v574_v30 = vsub.s32 1, %v1527_v58 }
 0x11a   : > { %v463_v36 = vmax.f32 %v445_v32, 0.0  ;;  %v491_v37 = vsel %vm481_vm1, %v476_v34, 0.0  ;;  %v582_v32 = vsub.s32 3, %v1527_v58 }
 0x11b   : > { %v462_v40 = vmax.f32 %v440_v35, 0.0  ;;  %492 = vadd.xlane.f32.xlu1 %v491_v37  ;;  %v1171_v41 = vpop.f32.mrb[6].mxu0  ;;  %483 = vadd.xlane.f32.xlu0 %v482_v38  ;;  %v488_v47 = vsel %vm481_vm1, %v475_v39, 0.0  ;;  %v586_v37 = vsub.s32 4, %v1527_v58 }
 0x11c   : > { %v455_v42 = vadd.f32 %v1171_v41, %v1120_v14  ;;  %v449_v43 = vpop.f32.mrb[7].mxu0  ;;  %v478_v48 = vmul.f32 %v1129_v19, %v463_v36 }
 0x11d   : > { %v450_v44 = vadd.f32 %v1120_v14, %v449_v43  ;;  %v477_v45 = vmul.f32 %v1129_v19, %v462_v40 }
 0x11e   : > { %v465_v46 = vmax.f32 %v455_v42, 0.0  ;;  %v497_v52 = vsel %vm481_vm1, %v478_v48, 0.0  ;;  %v594_v48 = vsub.s32 6, %v1527_v58 }
 0x11f   : > { %v464_v49 = vmax.f32 %v450_v44, 0.0  ;;  %489 = vadd.xlane.f32.xlu1 %v488_v47  ;;  %v494_v50 = vsel %vm481_vm1, %v477_v45, 0.0  ;;  %v590_v44 = vsub.s32 5, %v1527_v58 }
 0x120   : > { %495 = vadd.xlane.f32.xlu0 %v494_v50  ;;  %v480_v53 = vmul.f32 %v1129_v19, %v465_v46 }
 0x121   : > { %v479_v51 = vmul.f32 %v1129_v19, %v464_v49 }
 0x122   : > { %v503_v55 = vsel %vm481_vm1, %v480_v53, 0.0 }
 0x123   : > { %498 = vadd.xlane.f32.xlu1 %v497_v52  ;;  %v500_v54 = vsel %vm481_vm1, %v479_v51, 0.0  ;;  %v598_v52 = vsub.s32 7, %v1527_v58  ;;  %v905_v58 = vld [vmem:[%s1694_s4 + $0x18] sm:$0xff] }
 0x124   : > { %501 = vadd.xlane.f32.xlu0 %v500_v54 }
 0x127   : > { %504 = vadd.xlane.f32.xlu1 %v503_v55 }
 0x1a4   : > { %v487_v59 = vpop.xlane.xlu0 %486 }
 0x1a5   : > { %v523_v0 = vrot.slane %v487_v59, %v1530_v60 }
 0x1a8   : > { %v493_v61 = vpop.xlane.xlu1 %492  ;;  %v484_v62 = vpop.xlane.xlu0 %483 }
 0x1a9   : > { %v519_v63 = vrot.slane %v484_v62, %v1530_v60  ;;  %v531_v4 = vrot.slane %v493_v61, %v1530_v60 }
 0x1ab   : > { %v549_v6 = vsel %vm548_vm2, %v523_v0, %v519_v63 }
 0x1ac   : > { %v490_v1 = vpop.xlane.xlu1 %489 }
 0x1ad   : > { %v527_v2 = vrot.slane %v490_v1, %v1530_v60  ;;  %v496_v3 = vpop.xlane.xlu0 %495 }
 0x1ae   : > { %v535_v14 = vrot.slane %v496_v3, %v1530_v60 }
 0x1af   : > { %v551_v15 = vsel %vm550_vm3, %v527_v2, %v549_v6 }
 0x1b0   : > { %v553_v16 = vsel %vm552_vm4, %v531_v4, %v551_v15  ;;  %v499_v17 = vpop.xlane.xlu1 %498 }
 0x1b1   : > { %v555_v18 = vsel %vm554_vm5, %v535_v14, %v553_v16  ;;  %v539_v19 = vrot.slane %v499_v17, %v1530_v60  ;;  %v502_v20 = vpop.xlane.xlu0 %501 }
 0x1b2   : > { %v543_v21 = vrot.slane %v502_v20, %v1530_v60 }
 0x1b3   : > { %v557_v22 = vsel %vm556_vm6, %v539_v19, %v555_v18 }
 0x1b4   : > { %v505_v23 = vpop.xlane.xlu1 %504  ;;  %v559_v25 = vsel %vm558_vm7, %v543_v21, %v557_v22 }
 0x1b5   : > { %v547_v24 = vrot.slane %v505_v23, %v1530_v60 }
 0x1b7   : > { %v561_v26 = vsel %vm560_vm8, %v547_v24, %v559_v25 }
 0x1b8   : > { %v564_v27 = vsel %vm563_vm9, %v561_v26, -inf }
 0x1b9   : > { %565 = vmax.xlane.f32.xlu0 %v564_v27 }
 0x246   : > { %v566_v33 = vpop.xlane.xlu0 %565 }
 0x247   : > { %v571_v34 = vrot.slane %v566_v33, %v570_v29  ;;  %v575_v35 = vrot.slane %v566_v33, %v574_v30  ;;  %v579_v36 = vrot.slane %v566_v33, %v578_v31  ;;  %v583_v38 = vrot.slane %v566_v33, %v582_v32 }
 0x248   : > { %v587_v45 = vrot.slane %v566_v33, %v586_v37  ;;  %v591_v49 = vrot.slane %v566_v33, %v590_v44  ;;  %v595_v53 = vrot.slane %v566_v33, %v594_v48 }
 0x249   : > { %v608_v39 = vsub.f32 %v484_v62, %v571_v34  ;;  %v609_v40 = vsub.f32 %v487_v59, %v575_v35  ;;  %v610_v41 = vsub.f32 %v490_v1, %v579_v36  ;;  %v611_v46 = vsub.f32 %v493_v61, %v583_v38 }
 0x24a   : > { %v612_v50 = vsub.f32 %v496_v3, %v587_v45  ;;  %v613_v54 = vsub.f32 %v499_v17, %v591_v49  ;;  %v599_v59 = vrot.slane %v566_v33, %v598_v52  ;;  %v614_v61 = vsub.f32 %v502_v20, %v595_v53 }
 0x24b   : > { %v616_v42 = vmul.f32 1.442695, %v608_v39  ;;  %v618_v43 = vmul.f32 1.442695, %v609_v40  ;;  %v620_v47 = vmul.f32 1.442695, %v610_v41 }
 0x24c   : > { %v622_v51 = vmul.f32 1.442695, %v611_v46  ;;  %v624_v55 = vmul.f32 1.442695, %v612_v50  ;;  %v626_v62 = vmul.f32 1.442695, %v613_v54  ;;  %v615_v0 = vsub.f32 %v505_v23, %v599_v59 }
 0x24d   : > { %1244 = vpow2.f32 %v616_v42  ;;  %v628_v1 = vmul.f32 1.442695, %v614_v61 }
 0x24e   : > { %1246 = vpow2.f32 %v618_v43  ;;  %v630_v3 = vmul.f32 1.442695, %v615_v0  ;;  %v1336_v0 = vmov 0.0|0.0  }
 0x24f   : > { %1248 = vpow2.f32 %v620_v47  ;;  %1191 = vmatprep.subr.bf16.mxu1 %v1336_v0 }
 0x250   : > { %1250 = vpow2.f32 %v622_v51 }
 0x251   : > { %1252 = vpow2.f32 %v624_v55 }
 0x252   : > { %1254 = vpow2.f32 %v626_v62 }
 0x253   : > { %1256 = vpow2.f32 %v628_v1 }
 0x254   : > { %1258 = vpow2.f32 %v630_v3 }
 0x257   : > { %v1245_v56 = vpop.eup %1244 }
 0x258   : > { %v1247_v57 = vpop.eup %1246  ;;  %641 = vperm.xlu1 %1242, %v1245_v56  }
 0x259   : > { %644 = vperm.xlu0 %1243, %v1247_v57   ;;  %v1249_v63 = vpop.eup %1248 }
 0x25a   : > { %v1251_v2 = vpop.eup %1250 }
 0x25b   : > { %v1253_v4 = vpop.eup %1252 }
 0x25c   : > { %647 = vperm.xlu1 %1242, %v1249_v63   ;;  %v1255_v6 = vpop.eup %1254 }
 0x25d   : > { %v1257_v14 = vpop.eup %1256 }
 0x25e   : > { %v1259_v15 = vpop.eup %1258 }
 0x260   : > { %650 = vperm.xlu1 %1242, %v1251_v2  }
 0x264   : > { %653 = vperm.xlu1 %1242, %v1253_v4  }
 0x268   : > { %656 = vperm.xlu1 %1242, %v1255_v6  }
 0x26c   : > { %659 = vperm.xlu1 %1242, %v1257_v14  }
 0x270   : > { %662 = vperm.xlu1 %1242, %v1259_v15  }
 0x2d7   : > { %v642_v16 = vpop.permute.xlu1 %641 }
 0x2d8   : > { %v645_v20 = vpop.permute.xlu0 %644  ;;  %v667_v23 = vrot.slane %v642_v16, %v1530_v60 }
 0x2d9   : > { %v671_v22 = vrot.slane %v645_v20, %v1530_v60 }
 0x2db   : > { %v648_v17 = vpop.permute.xlu1 %647  ;;  %v696_v28 = vsel %vm548_vm2, %v671_v22, %v667_v23 }
 0x2dc   : > { %v675_v24 = vrot.slane %v648_v17, %v1530_v60 }
 0x2de   : > { %v697_v34 = vsel %vm550_vm3, %v675_v24, %v696_v28 }
 0x2df   : > { %v651_v18 = vpop.permute.xlu1 %650 }
 0x2e0   : > { %v679_v25 = vrot.slane %v651_v18, %v1530_v60 }
 0x2e2   : > { %v698_v36 = vsel %vm552_vm4, %v679_v25, %v697_v34 }
 0x2e3   : > { %v654_v19 = vpop.permute.xlu1 %653 }
 0x2e4   : > { %v683_v26 = vrot.slane %v654_v19, %v1530_v60 }
 0x2e6   : > { %v699_v38 = vsel %vm554_vm5, %v683_v26, %v698_v36 }
 0x2e7   : > { %v657_v21 = vpop.permute.xlu1 %656 }
 0x2e8   : > { %v687_v33 = vrot.slane %v657_v21, %v1530_v60 }
 0x2ea   : > { %v700_v40 = vsel %vm556_vm6, %v687_v33, %v699_v38 }
 0x2eb   : > { %v660_v27 = vpop.permute.xlu1 %659 }
 0x2ec   : > { %v691_v35 = vrot.slane %v660_v27, %v1530_v60 }
 0x2ee   : > { %v701_v42 = vsel %vm558_vm7, %v691_v35, %v700_v40 }
 0x2ef   : > { %v663_v39 = vpop.permute.xlu1 %662 }
 0x2f0   : > { %v695_v41 = vrot.slane %v663_v39, %v1530_v60 }
 0x2f2   : > { %v702_v43 = vsel %vm560_vm8, %v695_v41, %v701_v42 }
 0x2f3   : > { %v704_v45 = vsel %vm563_vm9, %v702_v43, 0.0 }
 0x2f4   : > { %705 = vadd.xlane.f32.xlu1 %v704_v45 }
 0x381   : > { %v706_v46 = vpop.xlane.xlu1 %705 }
 0x382   : > { %1260 = vrcp.f32 %v706_v46 }
 0x38c   : > { %v1261_v47 = vpop.eup %1260 }
 0x38d   : > { %v712_v49 = vrot.slane %v1261_v47, %v570_v29  ;;  %v716_v51 = vrot.slane %v1261_v47, %v574_v30  ;;  %v720_v54 = vrot.slane %v1261_v47, %v578_v31  ;;  %v724_v59 = vrot.slane %v1261_v47, %v582_v32 }
 0x38e   : > { %v728_v62 = vrot.slane %v1261_v47, %v586_v37  ;;  %v732_v30 = vrot.slane %v1261_v47, %v590_v44  ;;  %v736_v31 = vrot.slane %v1261_v47, %v594_v48  ;;  %v740_v32 = vrot.slane %v1261_v47, %v598_v52  ;;  %v902_v37 = vld [vmem:[%s1694_s4] sm:$0xff]  ;;  %v903_v44 = vld [vmem:[%s1694_s4 + $0x8] sm:$0xff]  ;;  %v904_v48 = vld [vmem:[%s1694_s4 + $0x10] sm:$0xff] }
 0x38f   : > { %v749_v50 = vmul.f32 %v1245_v56, %v712_v49  ;;  %v750_v53 = vmul.f32 %v1247_v57, %v716_v51  ;;  %v751_v55 = vmul.f32 %v1249_v63, %v720_v54  ;;  %v752_v61 = vmul.f32 %v1251_v2, %v724_v59 }
 0x390   : > { %v753_v29 = vmul.f32 %v1253_v4, %v728_v62  ;;  %v754_v56 = vmul.f32 %v1255_v6, %v732_v30  ;;  %v755_v57 = vmul.f32 %v1257_v14, %v736_v31  ;;  %v756_v63 = vmul.f32 %v1259_v15, %v740_v32 }
 0x391   : > { %766 = vperm.xlu0 %1243, %v749_v50   ;;  %v1192_v1 = vpack.c.bf16 %v903_v44, %v902_v37  ;;  %v1338_v52 = vmov 0.0   ;;  %v1195_v2 = vpack.c.bf16 %v905_v58, %v904_v48 }
 0x392   : > { %1180 = vmatprep.mubr.msk.f32.mxu1 %vm1337_vm10, %v1338_v52 }
 0x393   : > { %1193 = vmatpush3.bf16.msra.mxu1 %v1192_v1 }
 0x394   : > { %1194 = vmatprep.subr.bf16.mxu1 %v1336_v0 }
 0x395   : > { %769 = vperm.xlu0 %1243, %v750_v53  }
 0x397   : > { %1196 = vmatpush3.bf16.msra.mxu1 %v1195_v2 }
 0x399   : > { %772 = vperm.xlu0 %1243, %v751_v55  }
 0x39d   : > { %775 = vperm.xlu0 %1243, %v752_v61  }
 0x3a1   : > { %778 = vperm.xlu0 %1243, %v753_v29  }
 0x3a5   : > { %781 = vperm.xlu0 %1243, %v754_v56  }
 0x3a9   : > { %784 = vperm.xlu0 %1243, %v755_v57  }
 0x3ad   : > { %787 = vperm.xlu0 %1243, %v756_v63  }
 0x410   : > { %v767_v3 = vpop.permute.xlu0 %766 }
 0x411   : > { %v838_v14 = vmul.f32 %v767_v3, %v1481_v5  ;;  %v792_v39 = vrot.slane %v767_v3, %v1530_v60 }
 0x413   : > { %v846_v18 = vsel %vm328_vm0, %v838_v14, 0.0 }
 0x414   : > { %v770_v4 = vpop.permute.xlu0 %769  ;;  %v847_v23 = vrot.slane %v846_v18, 4 }
 0x415   : > { %v839_v6 = vmul.f32 %v770_v4, %v1485_v7 }
 0x416   : > { %v848_v27 = vadd.f32 %v847_v23, %v846_v18 }
 0x417   : > { %v853_v17 = vsel %vm328_vm0, %v839_v6, 0.0 }
 0x418   : > { %v773_v15 = vpop.permute.xlu0 %772  ;;  %v854_v22 = vrot.slane %v853_v17, 4 }
 0x419   : > { %v840_v16 = vmul.f32 %v773_v15, %v1487_v8  ;;  %v800_v41 = vrot.slane %v773_v15, %v1530_v60 }
 0x41a   : > { %v855_v8 = vadd.f32 %v854_v22, %v853_v17 }
 0x41b   : > { %v860_v19 = vsel %vm328_vm0, %v840_v16, 0.0 }
 0x41c   : > { %v776_v20 = vpop.permute.xlu0 %775  ;;  %v861_v24 = vrot.slane %v860_v19, 4  ;;  %v856_v40 = vrot.slane %v855_v8, 2 }
 0x41d   : > { %v841_v21 = vmul.f32 %v776_v20, %v1493_v9  ;;  %v796_v9 = vrot.slane %v770_v4, %v1530_v60  ;;  %v804_v45 = vrot.slane %v776_v20, %v1530_v60 }
 0x41e   : > { %v862_v28 = vadd.f32 %v861_v24, %v860_v19  ;;  %v857_v59 = vadd.f32 %v856_v40, %v855_v8 }
 0x41f   : > { %v867_v7 = vsel %vm328_vm0, %v841_v21, 0.0  ;;  %v821_v51 = vsel %vm548_vm2, %v796_v9, %v792_v39 }
 0x420   : > { %v868_v25 = vrot.slane %v867_v7, 4  ;;  %v779_v5 = vpop.permute.xlu0 %778  ;;  %v863_v43 = vrot.slane %v862_v28, 2  ;;  %v822_v61 = vsel %vm550_vm3, %v800_v41, %v821_v51  ;;  %v858_v52 = vrot.slane %v857_v59, 1 }
 0x421   : > { %v842_v26 = vmul.f32 %v779_v5, %v1495_v10  ;;  %v849_v10 = vrot.slane %v848_v27, 2  ;;  %v808_v49 = vrot.slane %v779_v5, %v1530_v60  ;;  %v823_v31 = vsel %vm552_vm4, %v804_v45, %v822_v61 }
 0x422   : > { %v869_v34 = vadd.f32 %v868_v25, %v867_v7  ;;  %v864_v56 = vadd.f32 %v863_v43, %v862_v28 }
 0x423   : > { %v874_v33 = vsel %vm328_vm0, %v842_v26, 0.0  ;;  %v850_v30 = vadd.f32 %v849_v10, %v848_v27  ;;  %v824_v63 = vsel %vm554_vm5, %v808_v49, %v823_v31 }
 0x424   : > { %v875_v35 = vrot.slane %v874_v33, 4  ;;  %v782_v36 = vpop.permute.xlu0 %781  ;;  %v870_v47 = vrot.slane %v869_v34, 2  ;;  %v865_v6 = vrot.slane %v864_v56, 1 }
 0x425   : > { %v843_v38 = vmul.f32 %v782_v36, %v1501_v11  ;;  %v812_v54 = vrot.slane %v782_v36, %v1530_v60  ;;  %v851_v16 = vrot.slane %v850_v30, 1 }
 0x426   : > { %v876_v42 = vadd.f32 %v875_v35, %v874_v33  ;;  %v871_v32 = vadd.f32 %v870_v47, %v869_v34  ;;  %v866_v23 = vadd.f32 %v865_v6, %v864_v56 }
 0x427   : > { %v881_v46 = vsel %vm328_vm0, %v843_v38, 0.0  ;;  %v825_v0 = vsel %vm556_vm6, %v812_v54, %v824_v63  ;;  %v852_v24 = vadd.f32 %v851_v16, %v850_v30 }
 0x428   : > { %v882_v50 = vrot.slane %v881_v46, 4  ;;  %v785_v11 = vpop.permute.xlu0 %784  ;;  %v877_v53 = vrot.slane %v876_v42, 2  ;;  %v872_v17 = vrot.slane %v871_v32, 1 }
 0x429   : > { %v844_v55 = vmul.f32 %v785_v11, %v1503_v12  ;;  %v816_v29 = vrot.slane %v785_v11, %v1530_v60 }
 0x42a   : > { %v883_v62 = vadd.f32 %v882_v50, %v881_v46  ;;  %v878_v48 = vadd.f32 %v877_v53, %v876_v42  ;;  %v873_v7 = vadd.f32 %v872_v17, %v871_v32  ;;  %v1130_v42 = vld [vmem:[%s1695_s5] ss:$0 sm:$0xff] }
 0x42b   : > { %v888_v57 = vsel %vm328_vm0, %v844_v55, 0.0  ;;  %v826_v3 = vsel %vm558_vm7, %v816_v29, %v825_v0 }
 0x42c   : > { %v884_v37 = vrot.slane %v883_v62, 2  ;;  %v889_v44 = vrot.slane %v888_v57, 4  ;;  %v788_v12 = vpop.permute.xlu0 %787  ;;  %v879_v20 = vrot.slane %v878_v48, 1 }
 0x42d   : > { %v820_v1 = vrot.slane %v788_v12, %v1530_v60  ;;  %v845_v58 = vmul.f32 %v788_v12, %v1509_v13  ;;  %v859_v60 = vadd.f32 %v858_v52, %v857_v59 }
 0x42e   : > { %v885_v2 = vadd.f32 %v884_v37, %v883_v62  ;;  %v890_v4 = vadd.f32 %v889_v44, %v888_v57  ;;  %v880_v26 = vadd.f32 %v879_v20, %v878_v48 }
 0x42f   : > { %v827_v14 = vsel %vm560_vm8, %v820_v1, %v826_v3  ;;  %v895_v15 = vsel %vm328_vm0, %v845_v58, 0.0  ;;  %v921_v8 = vsel %vm548_vm2, %v859_v60, %v852_v24 }
 0x430   : > { %v891_v18 = vrot.slane %v890_v4, 2  ;;  %829 = vst.msk [vmem:[%s308_s19] sm:$0xff] %vm563_vm9, %v827_v14  ;;  %v896_v19 = vrot.slane %v895_v15, 4  ;;  %v886_v21 = vrot.slane %v885_v2, 1  ;;  %v922_v33 = vsel %vm550_vm3, %v866_v23, %v921_v8 }
 0x431   : > { %v923_v36 = vsel %vm552_vm4, %v873_v7, %v922_v33 }
 0x432   : > { %v892_v13 = vadd.f32 %v891_v18, %v890_v4  ;;  %v897_v22 = vadd.f32 %v896_v19, %v895_v15  ;;  %v887_v27 = vadd.f32 %v886_v21, %v885_v2  ;;  %v924_v9 = vsel %vm554_vm5, %v880_v26, %v923_v36 }
 0x434   : > { %v893_v25 = vrot.slane %v892_v13, 1  ;;  %v898_v5 = vrot.slane %v897_v22, 2  ;;  %v925_v39 = vsel %vm556_vm6, %v887_v27, %v924_v9 }
 0x436   : > { %v899_v28 = vadd.f32 %v898_v5, %v897_v22  ;;  %v894_v34 = vadd.f32 %v893_v25, %v892_v13 }
 0x438   : > { %v900_v35 = vrot.slane %v899_v28, 1  ;;  %v926_v40 = vsel %vm558_vm7, %v894_v34, %v925_v39 }
 0x43a   : > { %v901_v38 = vadd.f32 %v900_v35, %v899_v28 }
 0x43c   : > { %v927_v41 = vsel %vm560_vm8, %v901_v38, %v926_v40 }
 0x43d   : > { %1181 = vmatmul.mubr.msk.f32.vlgmr.msra.gmra.mrb[0].mxu1 %vm328_vm0, %v927_v41 }
 0x510   : > { %v996_v10 = vpop.f32.mrb[0].mxu1 }
 0x511   : > { %v997_v43 = vadd.f32 %v1130_v42, %v996_v10  ;;  %v1182_v45 = vpop.f32.mrb[1].mxu1 }
 0x513   : > { %v1001_v46 = vsel %vm1000_vm11, %v997_v43, -inf }
 0x514   : > { %1002 = vmax.xlane.f32.xlu1 %v1001_v46 }
 0x5a1   : > { %v1003_v47 = vpop.xlane.xlu1 %1002 }
 0x5a2   : > { %v1004_v49 = vsub.f32 %v997_v43, %v1003_v47 }
 0x5a4   : > { %v1005_v50 = vmul.f32 1.442695, %v1004_v49 }
 0x5a6   : > { %1262 = vpow2.f32 %v1005_v50 }
 0x5b0   : > { %v1263_v11 = vpop.eup %1262 }
 0x5b1   : > { %v1007_v51 = vsel %vm1000_vm11, %v1263_v11, 0.0 }
 0x5b2   : > { %1008 = vadd.xlane.f32.xlu0 %v1007_v51 }
 0x63f   : > { %v1009_v53 = vpop.xlane.xlu0 %1008 }
 0x640   : > { %1264 = vlog2.f32 %v1009_v53 }
 0x64a   : > { %v1265_v54 = vpop.eup %1264 }
 0x64b   : > { %v1011_v55 = vmul.f32 0.6931472, %v1265_v54 }
 0x64d   : > { %v1012_v59 = vsub.f32 %v1004_v49, %v1011_v55 }
 0x64f   : > { %1013 = vst.msk [vmem:[%s304_s13] sm:$0xff] %vm1000_vm11, %v1012_v59 }
 0x650 PF: > { %p18_p8 = scmp.ge.s32.totalorder %s1401_s29, 4   ;;  %s1701_s24 = smov %s1322_s25 }
 0x651   : > { %s1702_s25 = smov %s1326_s26  ;;  %s1703_s26 = smov %s1411_s9 }
 0x652   : > { %s1704_s27 = smov %s1401_s29  ;;  %20 = sbr.rel (!%p18_p8) target bundleno = 3 (0x3), region = 96 }
 0x659   :  { %1047 = vsyncpa [#allocation3], 1 }
 0x65a   :  { %1049 = vsyncpa [#allocation3 + $0x1], 1 }

</bundles_post_ra>
